<compile_context>
chip_gen: v6e
topology: v6e:2x2x1
jax: 0.10.0
libtpu: 0.0.40
codegen_flags: <defaults>
</compile_context>

<pallas_src>
import functools

import jax
import jax.numpy as jnp
from jax.experimental import pallas as pl
from jax.experimental.pallas import tpu as pltpu

LANE = 128          # padded feature width of every layer (lane-dense)
NUM_LAYERS = 5
MAX_TB = 2048       # cap on rows per batch tile (VMEM headroom on every gen)


def _round_up(n, m):
    return ((n + m - 1) // m) * m


def _tpu_kind():
    try:
        return jax.devices()[0].device_kind.lower()
    except Exception:
        return ""


def _num_tensorcores(kind):
    # v7x exposes 2 TensorCores per chip; v3/v4 megacore also benefits from a
    # "parallel" grid split.  v5e/v6e are single-TC.
    return 2 if any(t in kind for t in ("v7", "v4", "v3")) else 1


def _bf16_act_ok(kind):
    # v6e/v7x VALUs handle bf16 natively; keep the f32 activation path on v5e.
    return ("v6" in kind) or ("v7" in kind)


def _choose_tiling(batch, num_tc):
    """Pick (TB, padded_batch, grid) — grid=1 on 1-TC chips, >=2 on v7x."""
    b16 = _round_up(max(batch, 1), 16)                 # native bf16 sublane tile
    if num_tc >= 2 and b16 > 32:                       # skip split for tiny act batches
        tb = _round_up(pl.cdiv(b16, num_tc), 16)
    else:
        tb = b16
    tb = min(tb, MAX_TB)
    bp = _round_up(b16, tb)
    return tb, bp, bp // tb


# ----------------------------------------------------------------------------
# Kernel: one batch tile, whole 5-layer forward.
#   x_ref: (TB, 128)           bf16   input tile (zero-padded features)
#   w_ref: (128, 5*128)        bf16   packed weight slab (one 128x128 block/layer)
#   b_ref: (1, 5*128)          f32    packed bias slab
#   o_ref: (TB, 128)           bf16   padded output tile (lane-dense store)
# ----------------------------------------------------------------------------
def qnet_kernel(x_ref, w_ref, b_ref, o_ref, *, bf16_act):
    h = x_ref[...]                                           # bf16 -> MXU
    for l in range(NUM_LAYERS):                              # static unroll
        w = w_ref[:, l * LANE:(l + 1) * LANE]                # static slice (view)
        b = b_ref[:, l * LANE:(l + 1) * LANE]
        y = jnp.dot(h, w, preferred_element_type=jnp.float32) + b   # f32 accum
        if l < NUM_LAYERS - 1:
            if bf16_act:                                     # v6e/v7x: bf16 VPU
                h = jnp.maximum(y.astype(jnp.bfloat16), 0.0)
            else:                                            # v5e: f32 VPU, then cast
                h = jnp.maximum(y, 0.0).astype(jnp.bfloat16)
        else:
            o_ref[...] = y.astype(jnp.bfloat16)              # bf16 lane-dense store


# ----------------------------------------------------------------------------
# Parameter packing (done ONCE at init / per weight update, not per forward).
# ----------------------------------------------------------------------------
def pack_params(params):
    """params: list of (W[in,out] f32, b[out] f32) for fc1..fc5."""
    w_blocks, b_blocks = [], []
    for w, b in params:
        fan_in, fan_out = w.shape
        wp = jnp.zeros((LANE, LANE), jnp.float32).at[:fan_in, :fan_out].set(w)
        bp = jnp.zeros((1, LANE), jnp.float32).at[0, :fan_out].set(b.reshape(-1))
        w_blocks.append(wp)
        b_blocks.append(bp)
    w_slab = jnp.concatenate(w_blocks, axis=1).astype(jnp.bfloat16)  # (128, 640) bf16
    b_slab = jnp.concatenate(b_blocks, axis=1)                       # (1, 640)  f32
    return w_slab, b_slab


# ----------------------------------------------------------------------------
# Jitted wrapper: pad -> pallas_call (batch grid, resident slabs) -> unpad.
# ----------------------------------------------------------------------------
def _qnet_forward_impl(x, w_slab, b_slab, *, num_outputs, num_tc, bf16_act):
    batch, num_inputs = x.shape
    TB, bp, grid = _choose_tiling(batch, num_tc)

    # Zero-pad rows to bp and features to 128, cast to bf16 for the MXU.
    xp = jnp.zeros((bp, LANE), jnp.float32).at[:batch, :num_inputs].set(x)
    xp = xp.astype(jnp.bfloat16)

    cost = pl.CostEstimate(
        flops=2 * bp * LANE * LANE * NUM_LAYERS,
        transcendentals=0,
        bytes_accessed=(xp.size * 2 + w_slab.size * 2 + b_slab.size * 4
                        + bp * LANE * 2),
    )

    out_padded = pl.pallas_call(
        functools.partial(qnet_kernel, bf16_act=bf16_act),
        out_shape=jax.ShapeDtypeStruct((bp, LANE), jnp.bfloat16),
        grid=(grid,),
        in_specs=[
            pl.BlockSpec((TB, LANE), lambda i: (i, 0)),                  # x tile
            pl.BlockSpec((LANE, NUM_LAYERS * LANE), lambda i: (0, 0)),   # weights (resident)
            pl.BlockSpec((1, NUM_LAYERS * LANE), lambda i: (0, 0)),      # biases  (resident)
        ],
        out_specs=pl.BlockSpec((TB, LANE), lambda i: (i, 0)),
        compiler_params=pltpu.CompilerParams(
            dimension_semantics=("parallel",)),
        cost_estimate=cost,
    )(xp, w_slab, b_slab)

    return out_padded[:batch, :num_outputs].astype(jnp.float32)


qnet_forward = jax.jit(
    _qnet_forward_impl,
    static_argnames=("num_outputs", "num_tc", "bf16_act"))


# ----------------------------------------------------------------------------
# Init + references
# ----------------------------------------------------------------------------
def init_params(key, num_inputs, num_outputs, num_neurons):
    """Deterministic init matching torch.nn.Linear default scale; W stored (in,out)."""
    dims = [(num_inputs, num_neurons),
            (num_neurons, num_neurons),
            (num_neurons, num_neurons),
            (num_neurons, num_neurons),
            (num_neurons, num_outputs)]
    params = []
    for fan_in, fan_out in dims:
        key, kw, kb = jax.random.split(key, 3)
        bound = 1.0 / jnp.sqrt(fan_in)
        w = jax.random.uniform(kw, (fan_in, fan_out), jnp.float32, -bound, bound)
        b = jax.random.uniform(kb, (fan_out,), jnp.float32, -bound, bound)
        params.append((w, b))
    return params


def qnet_reference_f32(x, params):
    """Pure-JAX f32 reference (matches the PyTorch module exactly)."""
    h = x
    for i, (w, b) in enumerate(params):
        h = h @ w + b.reshape(1, -1)
        if i < len(params) - 1:
            h = jnp.maximum(h, 0.0)
    return h


def qnet_reference_bf16(x, params):
    """Reference emulating the kernel's bf16-operand / f32-accumulate / bf16-store math."""
    h = x.astype(jnp.bfloat16)
    out = None
    for i, (w, b) in enumerate(params):
        y = jnp.dot(h, w.astype(jnp.bfloat16),
                    preferred_element_type=jnp.float32) + b.reshape(1, -1)
        if i < len(params) - 1:
            h = jnp.maximum(y, 0.0).astype(jnp.bfloat16)
        else:
            out = y.astype(jnp.bfloat16).astype(jnp.float32)
    return out


# TODO(synk): Qnet.sample_action (host-side epsilon-greedy with python RNG) and
# save_model are host utilities, not part of the forward pass; not translated.

if __name__ == "__main__":
    num_inputs, num_outputs, num_neurons = 4, 2, 32

    kind = _tpu_kind()
    num_tc = _num_tensorcores(kind)
    bf16_act = _bf16_act_ok(kind)

    key = jax.random.PRNGKey(0)
    params = init_params(key, num_inputs, num_outputs, num_neurons)
    w_slab, b_slab = pack_params(params)   # packed ONCE, reused every forward

    for batch in (8, 512):   # small act batch (grid=1) and replay batch
        key, kx = jax.random.split(key)
        x = jax.random.normal(kx, (batch, num_inputs), jnp.float32)

        out = jax.block_until_ready(
            qnet_forward(x, w_slab, b_slab,
                         num_outputs=num_outputs, num_tc=num_tc,
                         bf16_act=bf16_act))
        assert out.shape == (batch, num_outputs)

        ref_bf16 = qnet_reference_bf16(x, params)
        ref_f32 = qnet_reference_f32(x, params)
        assert jnp.allclose(out, ref_bf16, atol=2e-2, rtol=2e-2), \
            f"mismatch vs bf16-emulated ref (batch={batch})"
        assert jnp.allclose(out, ref_f32, atol=1e-1, rtol=1e-1), \
            f"mismatch vs f32 ref (batch={batch})"

    print("KERNEL_OK")
</pallas_src>

<mosaic_0001>
module attributes {stable_mosaic.version = 11 : i64} {
  func.func @qnet_kernel(%arg0: i32, %arg1: memref<16x128xbf16, #tpu.memory_space<vmem>>, %arg2: memref<128x640xbf16, #tpu.memory_space<vmem>>, %arg3: memref<1x640xf32, #tpu.memory_space<vmem>>, %arg4: memref<16x128xbf16, #tpu.memory_space<vmem>>) attributes {dimension_semantics = [#tpu.dimension_semantics<parallel>], iteration_bounds = array<i64: 1>, scalar_prefetch = 0 : i64, scratch_operands = 0 : i64, tpu.core_type = #tpu.core_type<tc>, window_params = [{transform_indices = @transform_0, window_bounds = array<i64: 16, 128>}, {pipeline_mode = #tpu.pipeline_mode<synchronous>, transform_indices = @transform_1, window_bounds = array<i64: 128, 640>}, {pipeline_mode = #tpu.pipeline_mode<synchronous>, transform_indices = @transform_2, window_bounds = array<i64: 1, 640>}, {transform_indices = @transform_3, window_bounds = array<i64: 16, 128>}]} {
    %c0 = arith.constant 0 : index
    %c0_0 = arith.constant 0 : index
    %0 = vector.load %arg1[%c0, %c0_0] : memref<16x128xbf16, #tpu.memory_space<vmem>>, vector<16x128xbf16>
    %c0_1 = arith.constant 0 : index
    %c0_2 = arith.constant 0 : index
    %1 = vector.load %arg2[%c0_1, %c0_2] : memref<128x640xbf16, #tpu.memory_space<vmem>>, vector<128x128xbf16>
    %c0_3 = arith.constant 0 : index
    %c0_4 = arith.constant 0 : index
    %2 = vector.load %arg3[%c0_3, %c0_4] : memref<1x640xf32, #tpu.memory_space<vmem>>, vector<1x128xf32>
    %cst = arith.constant dense<0.000000e+00> : vector<16x128xf32>
    %3 = tpu.matmul %0, %1, %cst {dimension_numbers = #tpu.dot_dimension_numbers<[1], [0], [0], [1], [0, 0, 1, 1], [], []>} : vector<16x128xbf16>, vector<128x128xbf16>, vector<16x128xf32> -> vector<16x128xf32>
    %4 = vector.broadcast %2 : vector<1x128xf32> to vector<16x128xf32>
    %5 = arith.addf %3, %4 : vector<16x128xf32>
    %cst_5 = arith.constant 0.000000e+00 : f32
    %6 = vector.broadcast %cst_5 : f32 to vector<16x128xf32>
    %7 = arith.maximumf %5, %6 : vector<16x128xf32>
    %8 = arith.truncf %7 : vector<16x128xf32> to vector<16x128xbf16>
    %c0_6 = arith.constant 0 : index
    %c128 = arith.constant 128 : index
    %9 = vector.load %arg2[%c0_6, %c128] : memref<128x640xbf16, #tpu.memory_space<vmem>>, vector<128x128xbf16>
    %c0_7 = arith.constant 0 : index
    %c128_8 = arith.constant 128 : index
    %10 = vector.load %arg3[%c0_7, %c128_8] : memref<1x640xf32, #tpu.memory_space<vmem>>, vector<1x128xf32>
    %cst_9 = arith.constant dense<0.000000e+00> : vector<16x128xf32>
    %11 = tpu.matmul %8, %9, %cst_9 {dimension_numbers = #tpu.dot_dimension_numbers<[1], [0], [0], [1], [0, 0, 1, 1], [], []>} : vector<16x128xbf16>, vector<128x128xbf16>, vector<16x128xf32> -> vector<16x128xf32>
    %12 = vector.broadcast %10 : vector<1x128xf32> to vector<16x128xf32>
    %13 = arith.addf %11, %12 : vector<16x128xf32>
    %cst_10 = arith.constant 0.000000e+00 : f32
    %14 = vector.broadcast %cst_10 : f32 to vector<16x128xf32>
    %15 = arith.maximumf %13, %14 : vector<16x128xf32>
    %16 = arith.truncf %15 : vector<16x128xf32> to vector<16x128xbf16>
    %c0_11 = arith.constant 0 : index
    %c256 = arith.constant 256 : index
    %17 = vector.load %arg2[%c0_11, %c256] : memref<128x640xbf16, #tpu.memory_space<vmem>>, vector<128x128xbf16>
    %c0_12 = arith.constant 0 : index
    %c256_13 = arith.constant 256 : index
    %18 = vector.load %arg3[%c0_12, %c256_13] : memref<1x640xf32, #tpu.memory_space<vmem>>, vector<1x128xf32>
    %cst_14 = arith.constant dense<0.000000e+00> : vector<16x128xf32>
    %19 = tpu.matmul %16, %17, %cst_14 {dimension_numbers = #tpu.dot_dimension_numbers<[1], [0], [0], [1], [0, 0, 1, 1], [], []>} : vector<16x128xbf16>, vector<128x128xbf16>, vector<16x128xf32> -> vector<16x128xf32>
    %20 = vector.broadcast %18 : vector<1x128xf32> to vector<16x128xf32>
    %21 = arith.addf %19, %20 : vector<16x128xf32>
    %cst_15 = arith.constant 0.000000e+00 : f32
    %22 = vector.broadcast %cst_15 : f32 to vector<16x128xf32>
    %23 = arith.maximumf %21, %22 : vector<16x128xf32>
    %24 = arith.truncf %23 : vector<16x128xf32> to vector<16x128xbf16>
    %c0_16 = arith.constant 0 : index
    %c384 = arith.constant 384 : index
    %25 = vector.load %arg2[%c0_16, %c384] : memref<128x640xbf16, #tpu.memory_space<vmem>>, vector<128x128xbf16>
    %c0_17 = arith.constant 0 : index
    %c384_18 = arith.constant 384 : index
    %26 = vector.load %arg3[%c0_17, %c384_18] : memref<1x640xf32, #tpu.memory_space<vmem>>, vector<1x128xf32>
    %cst_19 = arith.constant dense<0.000000e+00> : vector<16x128xf32>
    %27 = tpu.matmul %24, %25, %cst_19 {dimension_numbers = #tpu.dot_dimension_numbers<[1], [0], [0], [1], [0, 0, 1, 1], [], []>} : vector<16x128xbf16>, vector<128x128xbf16>, vector<16x128xf32> -> vector<16x128xf32>
    %28 = vector.broadcast %26 : vector<1x128xf32> to vector<16x128xf32>
    %29 = arith.addf %27, %28 : vector<16x128xf32>
    %cst_20 = arith.constant 0.000000e+00 : f32
    %30 = vector.broadcast %cst_20 : f32 to vector<16x128xf32>
    %31 = arith.maximumf %29, %30 : vector<16x128xf32>
    %32 = arith.truncf %31 : vector<16x128xf32> to vector<16x128xbf16>
    %c0_21 = arith.constant 0 : index
    %c512 = arith.constant 512 : index
    %33 = vector.load %arg2[%c0_21, %c512] : memref<128x640xbf16, #tpu.memory_space<vmem>>, vector<128x128xbf16>
    %c0_22 = arith.constant 0 : index
    %c512_23 = arith.constant 512 : index
    %34 = vector.load %arg3[%c0_22, %c512_23] : memref<1x640xf32, #tpu.memory_space<vmem>>, vector<1x128xf32>
    %cst_24 = arith.constant dense<0.000000e+00> : vector<16x128xf32>
    %35 = tpu.matmul %32, %33, %cst_24 {dimension_numbers = #tpu.dot_dimension_numbers<[1], [0], [0], [1], [0, 0, 1, 1], [], []>} : vector<16x128xbf16>, vector<128x128xbf16>, vector<16x128xf32> -> vector<16x128xf32>
    %36 = vector.broadcast %34 : vector<1x128xf32> to vector<16x128xf32>
    %37 = arith.addf %35, %36 : vector<16x128xf32>
    %38 = arith.truncf %37 : vector<16x128xf32> to vector<16x128xbf16>
    %c0_25 = arith.constant 0 : index
    %c0_26 = arith.constant 0 : index
    %39 = vector.load %arg4[%c0_25, %c0_26] : memref<16x128xbf16, #tpu.memory_space<vmem>>, vector<16x128xbf16>
    tpu.vector_store %arg4[%c0_25, %c0_26], %38 {strides = array<i32>} : memref<16x128xbf16, #tpu.memory_space<vmem>>, vector<16x128xbf16>,
    return
  }
  func.func @transform_0(%arg0: i32) -> (i32, i32) {
    %c0_i32 = arith.constant 0 : i32
    %c0_i32_0 = arith.constant 0 : i32
    return %arg0, %c0_i32 : i32, i32
  }
  func.func @transform_1(%arg0: i32) -> (i32, i32) {
    %c0_i32 = arith.constant 0 : i32
    %c0_i32_0 = arith.constant 0 : i32
    %c0_i32_1 = arith.constant 0 : i32
    return %c0_i32, %c0_i32_0 : i32, i32
  }
  func.func @transform_2(%arg0: i32) -> (i32, i32) {
    %c0_i32 = arith.constant 0 : i32
    %c0_i32_0 = arith.constant 0 : i32
    %c0_i32_1 = arith.constant 0 : i32
    return %c0_i32, %c0_i32_0 : i32, i32
  }
  func.func @transform_3(%arg0: i32) -> (i32, i32) {
    %c0_i32 = arith.constant 0 : i32
    %c0_i32_0 = arith.constant 0 : i32
    return %arg0, %c0_i32 : i32, i32
  }
}

</mosaic_0001>

<bundles_post_ra>
// kernel: _qnet_forward_impl.1
= control target key start
LH: loop header
LB: loop body
LE: loop exit
PB: predicated region body
PF: predicated region fallthrough
CT: control target
= control target key end

     0   :  { %8 = vsyncpa [#allocation3], 0  ;;  %s892_s12 = smov [#allocation2]   ;;  %s991_s0 = inlined_call_operand.vmem [shape: bf16[16,128], index: 0, kind: input, shape index: {}]   ;;  %s992_s1 = inlined_call_operand.hbm [shape: bf16[128,640], index: 1, kind: input, shape index: {}]   ;;  %s993_s2 = inlined_call_operand.vmem [shape: f32[1,640], index: 2, kind: input, shape index: {}]   ;;  %s994_s3 = inlined_call_operand.vmem [shape: bf16[16,128], index: 3, kind: output, shape index: {}]  }
   0x1   :  { %s16_s13 = sshll.u32 %s892_s12, 4  ;;  %s17_s13 = int_to_ptr.vmem [resolvable:$true] %s16_s13 }
   0x2   :  { %s878_s14 = scalar_lea.vmem %s17_s13, 5120  ;;  %p883_p1 = scmp.lt.s32.totalorder %s17_s13, %s17_s13 }
   0x3   :  { %p879_p0 = scmp.ne.s32.totalorder %s17_s13, %s878_s14  ;;  %p884_p2 = scmp.lt.s32.totalorder %s878_s14, %s878_s14 }
   0x5   :  { %p885_p3 = por %p884_p2, %p883_p1 }
   0x7   :  { %p886_p4 = pnand %p885_p3, %p879_p0 }
   0x9   :  { %889 = shalt.err (!%p886_p4)
}
   0xa   :  { %s893_s15 = smov 320   ;;  %s894_s16 = smov 20  }
   0xb   :  { %22 = dma.hbm_to_vmem [thread:$0]  %s992_s1, 5120, %s17_s13, [#allocation3], %s893_s15, %s893_s15, %s894_s16  }
   0xc   :  { %890 = dma.done.wait [#allocation3], 5120  }
   0xd   :  { %891 = vsyncadd [#allocation3], 4294962176  ;;  %v895_v0 = vmov 0.0   ;;  %vm896_vm0 = vmmov 0   ;;  %v829_v1 = vld [vmem:[#allocation2 + $0x118] ss:$20 sps:$4 sm:$0xff]  }
   0xe   :  { %724 = vmatprep.subr.bf16.mxu0 %v895_v0  ;;  %740 = vmatprep.mubr.msk.bf16.mxu0 %vm896_vm0, %v895_v0  ;;  %v830_v2 = vld [vmem:[#allocation2 + $0xf0] ss:$20 sps:$4 sm:$0xff]   ;;  %v831_v3 = vld [vmem:[#allocation2 + $0xc8] ss:$20 sps:$4 sm:$0xff]   ;;  %v832_v5 = vld [vmem:[#allocation2 + $0xa0] ss:$20 sps:$4 sm:$0xff]  }
   0xf   :  { %744 = vmatprep.subr.bf16.mxu1 %v895_v0  ;;  %760 = vmatprep.mubr.msk.bf16.mxu1 %vm896_vm0, %v895_v0  ;;  %v838_v4 = vld [vmem:[#allocation2 + $0x11c] ss:$20 sps:$4 sm:$0xff]   ;;  %v839_v6 = vld [vmem:[#allocation2 + $0xf4] ss:$20 sps:$4 sm:$0xff]   ;;  %v833_v7 = vld [vmem:[#allocation2 + $0x78] ss:$20 sps:$4 sm:$0xff]  }
  0x10   :  { %725 = vmatpush3.bf16.msra.mxu0 %v829_v1  ;;  %745 = vmatpush3.bf16.msra.mxu1 %v838_v4  ;;  %v840_v8 = vld [vmem:[#allocation2 + $0xcc] ss:$20 sps:$4 sm:$0xff]   ;;  %v834_v9 = vld [vmem:[#allocation2 + $0x50] ss:$20 sps:$4 sm:$0xff]   ;;  %v835_v11 = vld [vmem:[#allocation2 + $0x28] ss:$20 sps:$4 sm:$0xff]  }
  0x11   :  { %726 = vmatprep.subr.bf16.mxu0 %v895_v0  ;;  %746 = vmatprep.subr.bf16.mxu1 %v895_v0  ;;  %v841_v10 = vld [vmem:[#allocation2 + $0xa4] ss:$20 sps:$4 sm:$0xff]   ;;  %v842_v12 = vld [vmem:[#allocation2 + $0x7c] ss:$20 sps:$4 sm:$0xff]   ;;  %v836_v13 = vld [vmem:[#allocation2] ss:$20 sps:$4 sm:$0xff]  }
  0x12   :  { %v837_v14 = vld [vmem:[%s991_s0] sm:$0xff]   ;;  %v843_v15 = vld [vmem:[#allocation2 + $0x54] ss:$20 sps:$4 sm:$0xff]   ;;  %v847_v19 = vld [vmem:[#allocation2 + $0xf8] ss:$20 sps:$4 sm:$0xff]  }
  0x13   :  { %v844_v16 = vld [vmem:[#allocation2 + $0x2c] ss:$20 sps:$4 sm:$0xff]   ;;  %v845_v17 = vld [vmem:[#allocation2 + $0x4] ss:$20 sps:$4 sm:$0xff]   ;;  %v849_v21 = vld [vmem:[#allocation2 + $0xa8] ss:$20 sps:$4 sm:$0xff]  }
  0x14   :  { %727 = vmatpush3.bf16.msra.mxu0 %v830_v2  ;;  %747 = vmatpush3.bf16.msra.mxu1 %v839_v6  ;;  %v846_v18 = vld [vmem:[#allocation2 + $0x120] ss:$20 sps:$4 sm:$0xff]   ;;  %v848_v20 = vld [vmem:[#allocation2 + $0xd0] ss:$20 sps:$4 sm:$0xff]   ;;  %v851_v33 = vld [vmem:[#allocation2 + $0x58] ss:$20 sps:$4 sm:$0xff]  }
  0x15   :  { %728 = vmatprep.subr.bf16.mxu0 %v895_v0  ;;  %748 = vmatprep.subr.bf16.mxu1 %v895_v0  ;;  %v850_v22 = vld [vmem:[#allocation2 + $0x80] ss:$20 sps:$4 sm:$0xff]   ;;  %v852_v34 = vld [vmem:[#allocation2 + $0x30] ss:$20 sps:$4 sm:$0xff]   ;;  %v853_v35 = vld [vmem:[#allocation2 + $0x8] ss:$20 sps:$4 sm:$0xff]  }
  0x16   :  { %v624_v23 = vld [vmem:[%s993_s2] ss:$0 sm:$0xff]  ;;  %v854_v36 = vld [vmem:[#allocation2 + $0x124] ss:$20 sps:$4 sm:$0xff]   ;;  %v855_v37 = vld [vmem:[#allocation2 + $0xfc] ss:$20 sps:$4 sm:$0xff]  }
  0x17   :  { %v856_v38 = vld [vmem:[#allocation2 + $0xd4] ss:$20 sps:$4 sm:$0xff]   ;;  %v857_v39 = vld [vmem:[#allocation2 + $0xac] ss:$20 sps:$4 sm:$0xff]   ;;  %v858_v40 = vld [vmem:[#allocation2 + $0x84] ss:$20 sps:$4 sm:$0xff]  }
  0x18   :  { %729 = vmatpush3.bf16.msra.mxu0 %v831_v3  ;;  %749 = vmatpush3.bf16.msra.mxu1 %v840_v8  ;;  %v634_v41 = vld [vmem:[%s993_s2 + $0x1] ss:$0 sm:$0xff]  ;;  %v859_v51 = vld [vmem:[#allocation2 + $0x5c] ss:$20 sps:$4 sm:$0xff]   ;;  %v860_v52 = vld [vmem:[#allocation2 + $0x34] ss:$20 sps:$4 sm:$0xff]  }
  0x19   :  { %730 = vmatprep.subr.bf16.mxu0 %v895_v0  ;;  %750 = vmatprep.subr.bf16.mxu1 %v895_v0  ;;  %v861_v53 = vld [vmem:[#allocation2 + $0xc] ss:$20 sps:$4 sm:$0xff]   ;;  %v862_v54 = vld [vmem:[#allocation2 + $0x128] ss:$20 sps:$4 sm:$0xff]   ;;  %v865_v57 = vld [vmem:[#allocation2 + $0xb0] ss:$20 sps:$4 sm:$0xff]  }
  0x1a   :  { %v863_v55 = vld [vmem:[#allocation2 + $0x100] ss:$20 sps:$4 sm:$0xff]   ;;  %v864_v56 = vld [vmem:[#allocation2 + $0xd8] ss:$20 sps:$4 sm:$0xff]   ;;  %v866_v58 = vld [vmem:[#allocation2 + $0x88] ss:$20 sps:$4 sm:$0xff]  }
  0x1b   :  { %v643_v59 = vld [vmem:[%s993_s2 + $0x2] ss:$0 sm:$0xff]  ;;  %v869_v8 = vld [vmem:[#allocation2 + $0x10] ss:$20 sps:$4 sm:$0xff]  }
  0x1c   :  { %731 = vmatpush3.bf16.msra.mxu0 %v832_v5  ;;  %751 = vmatpush3.bf16.msra.mxu1 %v841_v10  ;;  %v867_v6 = vld [vmem:[#allocation2 + $0x60] ss:$20 sps:$4 sm:$0xff]  }
  0x1d   :  { %732 = vmatprep.subr.bf16.mxu0 %v895_v0  ;;  %752 = vmatprep.subr.bf16.mxu1 %v895_v0 }
  0x20   :  { %733 = vmatpush3.bf16.msra.mxu0 %v833_v7  ;;  %753 = vmatpush3.bf16.msra.mxu1 %v842_v12  ;;  %v868_v7 = vld [vmem:[#allocation2 + $0x38] ss:$20 sps:$4 sm:$0xff]  }
  0x21   :  { %734 = vmatprep.subr.bf16.mxu0 %v895_v0  ;;  %754 = vmatprep.subr.bf16.mxu1 %v895_v0 }
  0x24   :  { %735 = vmatpush3.bf16.msra.mxu0 %v834_v9  ;;  %755 = vmatpush3.bf16.msra.mxu1 %v843_v15  ;;  %v652_v9 = vld [vmem:[%s993_s2 + $0x3] ss:$0 sm:$0xff] }
  0x25   :  { %736 = vmatprep.subr.bf16.mxu0 %v895_v0  ;;  %756 = vmatprep.subr.bf16.mxu1 %v895_v0 }
  0x28   :  { %737 = vmatpush3.bf16.msra.mxu0 %v835_v11  ;;  %757 = vmatpush3.bf16.msra.mxu1 %v844_v16 }
  0x29   :  { %738 = vmatprep.subr.bf16.mxu0 %v895_v0  ;;  %758 = vmatprep.subr.bf16.mxu1 %v895_v0 }
  0x2c   :  { %739 = vmatpush3.bf16.msra.mxu0 %v836_v13  ;;  %759 = vmatpush3.bf16.msra.mxu1 %v845_v17 }
  0x2d   :  { %764 = vmatprep.subr.bf16.mxu0 %v895_v0  ;;  %784 = vmatprep.subr.bf16.mxu1 %v895_v0 }
  0x2f   :  { %741 = vmatmul.mubr.bf16.vlgmr.msra.gmra.mxu0 %v837_v14 }
  0x30   :  { %780 = vmatprep.mubr.msk.bf16.mxu0 %vm896_vm0, %v895_v0  ;;  %765 = vmatpush3.bf16.msra.mxu0 %v846_v18 }
  0x31   :  { %766 = vmatprep.subr.bf16.mxu0 %v895_v0 }
  0x34   :  { %767 = vmatpush3.bf16.msra.mxu0 %v847_v19 }
  0x35   :  { %768 = vmatprep.subr.bf16.mxu0 %v895_v0 }
  0x38   :  { %769 = vmatpush3.bf16.msra.mxu0 %v848_v20 }
  0x39   :  { %770 = vmatprep.subr.bf16.mxu0 %v895_v0 }
  0x3c   :  { %771 = vmatpush3.bf16.msra.mxu0 %v849_v21 }
  0x3d   :  { %772 = vmatprep.subr.bf16.mxu0 %v895_v0 }
  0x40   :  { %773 = vmatpush3.bf16.msra.mxu0 %v850_v22 }
  0x41   :  { %774 = vmatprep.subr.bf16.mxu0 %v895_v0 }
  0x44   :  { %775 = vmatpush3.bf16.msra.mxu0 %v851_v33 }
  0x45   :  { %776 = vmatprep.subr.bf16.mxu0 %v895_v0 }
  0x48   :  { %777 = vmatpush3.bf16.msra.mxu0 %v852_v34 }
  0x49   :  { %778 = vmatprep.subr.bf16.mxu0 %v895_v0 }
  0x4c   :  { %779 = vmatpush3.bf16.msra.mxu0 %v853_v35 }
  0x4d   :  { %804 = vmatprep.subr.bf16.mxu0 %v895_v0 }
  0xef   :  { %v142_v24 = vpop.f32.mrf.mxu0 }
  0xf0   :  { %v143_v26 = vadd.f32 %v624_v23, %v142_v24 }
  0xf1   :  { %v742_v25 = vpop.f32.mrf.mxu0 }
  0xf2   :  { %v149_v30 = vmax.f32 %v143_v26, 0.0 }
  0xf3   :  { %v145_v27 = vpop.f32.mrf.mxu0 }
  0xf4   :  { %v146_v28 = vadd.f32 %v624_v23, %v145_v27 }
  0xf5   :  { %v743_v29 = vpop.f32.mrf.mxu0 }
  0xf6   :  { %v150_v31 = vmax.f32 %v146_v28, 0.0 }
  0xf8   :  { %v151_v32 = vpack.c.bf16 %v150_v31, %v149_v30 }
  0xfa   :  { %761 = vmatmul.mubr.bf16.vlgmr.msra.gmra.mxu1 %v151_v32 }
  0xfb   :  { %800 = vmatprep.mubr.msk.bf16.mxu1 %vm896_vm0, %v895_v0  ;;  %785 = vmatpush3.bf16.msra.mxu1 %v854_v36 }
  0xfc   :  { %786 = vmatprep.subr.bf16.mxu1 %v895_v0 }
  0xff   :  { %787 = vmatpush3.bf16.msra.mxu1 %v855_v37 }
 0x100   :  { %788 = vmatprep.subr.bf16.mxu1 %v895_v0 }
 0x103   :  { %789 = vmatpush3.bf16.msra.mxu1 %v856_v38 }
 0x104   :  { %790 = vmatprep.subr.bf16.mxu1 %v895_v0 }
 0x107   :  { %791 = vmatpush3.bf16.msra.mxu1 %v857_v39 }
 0x108   :  { %792 = vmatprep.subr.bf16.mxu1 %v895_v0 }
 0x10b   :  { %793 = vmatpush3.bf16.msra.mxu1 %v858_v40 }
 0x10c   :  { %794 = vmatprep.subr.bf16.mxu1 %v895_v0 }
 0x10f   :  { %795 = vmatpush3.bf16.msra.mxu1 %v859_v51 }
 0x110   :  { %796 = vmatprep.subr.bf16.mxu1 %v895_v0 }
 0x113   :  { %797 = vmatpush3.bf16.msra.mxu1 %v860_v52 }
 0x114   :  { %798 = vmatprep.subr.bf16.mxu1 %v895_v0 }
 0x117   :  { %799 = vmatpush3.bf16.msra.mxu1 %v861_v53 }
 0x1ba   :  { %v257_v42 = vpop.f32.mrf.mxu1 }
 0x1bb   :  { %v258_v44 = vadd.f32 %v634_v41, %v257_v42 }
 0x1bc   :  { %v762_v43 = vpop.f32.mrf.mxu1 }
 0x1bd   :  { %v264_v48 = vmax.f32 %v258_v44, 0.0 }
 0x1be   :  { %v260_v45 = vpop.f32.mrf.mxu1 }
 0x1bf   :  { %v261_v46 = vadd.f32 %v634_v41, %v260_v45 }
 0x1c0   :  { %v763_v47 = vpop.f32.mrf.mxu1 }
 0x1c1   :  { %v265_v49 = vmax.f32 %v261_v46, 0.0 }
 0x1c3   :  { %v266_v50 = vpack.c.bf16 %v265_v49, %v264_v48 }
 0x1c5   :  { %781 = vmatmul.mubr.bf16.vlgmr.msra.gmra.mxu0 %v266_v50 }
 0x1c6   :  { %820 = vmatprep.mubr.msk.bf16.mxu0 %vm896_vm0, %v895_v0  ;;  %805 = vmatpush3.bf16.msra.mxu0 %v862_v54 }
 0x1c7   :  { %806 = vmatprep.subr.bf16.mxu0 %v895_v0 }
 0x1ca   :  { %807 = vmatpush3.bf16.msra.mxu0 %v863_v55 }
 0x1cb   :  { %808 = vmatprep.subr.bf16.mxu0 %v895_v0 }
 0x1ce   :  { %809 = vmatpush3.bf16.msra.mxu0 %v864_v56 }
 0x1cf   :  { %810 = vmatprep.subr.bf16.mxu0 %v895_v0 }
 0x1d2   :  { %811 = vmatpush3.bf16.msra.mxu0 %v865_v57 }
 0x1d3   :  { %812 = vmatprep.subr.bf16.mxu0 %v895_v0 }
 0x1d6   :  { %813 = vmatpush3.bf16.msra.mxu0 %v866_v58 }
 0x1d7   :  { %814 = vmatprep.subr.bf16.mxu0 %v895_v0 }
 0x1da   :  { %815 = vmatpush3.bf16.msra.mxu0 %v867_v6 }
 0x1db   :  { %816 = vmatprep.subr.bf16.mxu0 %v895_v0 }
 0x1de   :  { %817 = vmatpush3.bf16.msra.mxu0 %v868_v7 }
 0x1df   :  { %818 = vmatprep.subr.bf16.mxu0 %v895_v0  ;;  %v661_v0 = vld [vmem:[%s993_s2 + $0x4] ss:$0 sm:$0xff] }
 0x1e2   :  { %819 = vmatpush3.bf16.msra.mxu0 %v869_v8 }
 0x285   :  { %v372_v60 = vpop.f32.mrf.mxu0 }
 0x286   :  { %v373_v62 = vadd.f32 %v643_v59, %v372_v60 }
 0x287   :  { %v782_v61 = vpop.f32.mrf.mxu0 }
 0x288   :  { %v379_v3 = vmax.f32 %v373_v62, 0.0 }
 0x289   :  { %v375_v63 = vpop.f32.mrf.mxu0 }
 0x28a   :  { %v376_v1 = vadd.f32 %v643_v59, %v375_v63 }
 0x28b   :  { %v783_v2 = vpop.f32.mrf.mxu0 }
 0x28c   :  { %v380_v4 = vmax.f32 %v376_v1, 0.0 }
 0x28e   :  { %v381_v5 = vpack.c.bf16 %v380_v4, %v379_v3 }
 0x290   :  { %801 = vmatmul.mubr.bf16.vlgmr.msra.gmra.mxu1 %v381_v5 }
 0x350   :  { %v487_v10 = vpop.f32.mrf.mxu1 }
 0x351   :  { %v488_v12 = vadd.f32 %v652_v9, %v487_v10 }
 0x352   :  { %v802_v11 = vpop.f32.mrf.mxu1 }
 0x353   :  { %v494_v16 = vmax.f32 %v488_v12, 0.0 }
 0x354   :  { %v490_v13 = vpop.f32.mrf.mxu1 }
 0x355   :  { %v491_v14 = vadd.f32 %v652_v9, %v490_v13 }
 0x356   :  { %v803_v15 = vpop.f32.mrf.mxu1 }
 0x357   :  { %v495_v17 = vmax.f32 %v491_v14, 0.0 }
 0x359   :  { %v496_v18 = vpack.c.bf16 %v495_v17, %v494_v16 }
 0x35b   :  { %821 = vmatmul.mubr.bf16.vlgmr.msra.gmra.mxu0 %v496_v18 }
 0x41b   :  { %v602_v19 = vpop.f32.mrf.mxu0 }
 0x41c   :  { %v603_v22 = vadd.f32 %v661_v0, %v602_v19 }
 0x41d   :  { %v822_v20 = vpop.f32.mrf.mxu0 }
 0x41f   :  { %v605_v21 = vpop.f32.mrf.mxu0 }
 0x420   :  { %v606_v23 = vadd.f32 %v661_v0, %v605_v21 }
 0x421   :  { %v823_v24 = vpop.f32.mrf.mxu0 }
 0x422   :  { %v677_v25 = vpack.c.bf16 %v606_v23, %v603_v22 }
 0x424   :  { %678 = vst [vmem:[%s994_s3] sm:$0xff] %v677_v25  }
 0x425   :  { %623 = vsyncpa [#allocation3], 1 }

</bundles_post_ra>
